<compile_context>
chip_gen: v5e
topology: v5e:2x2
jax: 0.10.0
libtpu: 0.0.40
codegen_flags: <defaults>
</compile_context>

<pallas_src>
import jax
import jax.numpy as jnp
import numpy as np
from jax import lax
from jax.experimental import pallas as pl
from jax.experimental.pallas import tpu as pltpu

EPSILON = 0.02
TEMPERATURE = 0.1
SINKHORN_ITERS = 3


def _spin_kernel(x_ref, wh_ref, bh_ref, wc_ref, out_ref):
    twoB, T, D = x_ref.shape
    B = twoB // 2
    C = wh_ref.shape[1]
    K = wc_ref.shape[1]
    N2 = twoB * T                      # rows across both views

    # ---- weight_norm with g == 1: unit-L2 columns of the (C, K) matrix v ----
    v = wc_ref[...]
    wc = v * lax.rsqrt(jnp.sum(v * v, axis=0, keepdims=True))

    # ---- head Linear: one fused matmul over all 2N rows (bf16 in, f32 acc) ----
    x2d = x_ref[...].reshape(N2, D).astype(jnp.bfloat16)
    h = jnp.dot(x2d, wh_ref[...].astype(jnp.bfloat16),
                preferred_element_type=jnp.float32) + bh_ref[...]      # (2N, C)

    # ---- F.normalize(p=2, dim=1): L2 norm over the T axis (fp32) ----
    h3 = h.reshape(twoB, T, C)
    nrm_sq = jnp.sum(h3 * h3, axis=1, keepdims=True)                    # (2B,1,C)
    h3 = h3 * lax.rsqrt(jnp.maximum(nrm_sq, 1e-24))

    # ---- codebook projection: fused matmul over all 2N rows ----
    z = jnp.dot(h3.reshape(N2, C).astype(jnp.bfloat16), wc.astype(jnp.bfloat16),
                preferred_element_type=jnp.float32)                     # (2N, K)

    # ---- log_softmax(z / temperature) over K, both views in one pass ----
    s = z * (1.0 / TEMPERATURE)
    m = jnp.max(s, axis=1, keepdims=True)
    e = jnp.exp(s - m)
    log_p = (s - m) - jnp.log(jnp.sum(e, axis=1, keepdims=True))        # (2N, K)

    # ---- Sinkhorn-Knopp, both views vectorized as a (B, 2, T, K) stack ----
    # Layout: axis 1 is the view (0 = orig = x[0::2], 1 = perturb = x[1::2]).
    z4 = z.reshape(B, 2, T, K)
    zq = z4 * (1.0 / EPSILON)
    # Subtract the per-(view, codebook-column) max before exp.  The per-column
    # constant cancels exactly in the first column normalisation below, so the
    # result is unchanged while overflow is impossible and every column sum
    # is >= 1.
    col_max = jnp.max(jnp.max(zq, axis=2, keepdims=True), axis=0, keepdims=True)
    Q = jnp.exp(zq - col_max)                                           # (B,2,T,K)

    # The reference algorithm's /K, /N, *N and initial /sum(Q) are global
    # per-view scalars that cancel exactly in the subsequent per-sum
    # normalisations, so they are folded away.  Divides -> reciprocal-multiply.
    for _ in range(SINKHORN_ITERS):
        # per-codebook-entry sums over all N samples of each view  -> (1,2,1,K)
        col = jnp.sum(jnp.sum(Q, axis=2, keepdims=True), axis=0, keepdims=True)
        Q = Q * pl.reciprocal(col, approx=True)
        # per-sample sums over the K codebook entries               -> (B,2,T,1)
        row = jnp.sum(Q, axis=3, keepdims=True)
        Q = Q * pl.reciprocal(jnp.maximum(row, 1e-30), approx=True)

    # ---- cross-view cross-entropy: q_orig . log_p_perturb (and vice versa) ----
    lp4 = log_p.reshape(B, 2, T, K)
    loss = -0.5 * (jnp.sum(Q[:, 0] * lp4[:, 1], axis=-1)
                   + jnp.sum(Q[:, 1] * lp4[:, 0], axis=-1))             # (B, T)
    out_ref[...] = loss


def spin_forward(x, w_head, b_head, w_code_v):
    """x: (2B, T, D) fp32; w_head: (D, C); b_head: (C,); w_code_v: (C, K) raw v."""
    twoB, T, D = x.shape
    if twoB % 2 != 0:
        raise ValueError("Batch size must be divisible by 2 to infer views.")
    if x.ndim != 3:
        raise ValueError("Input should be 3D.")
    B = twoB // 2
    C = w_head.shape[1]
    K = w_code_v.shape[1]
    N = B * T
    n2 = 2 * N

    # Advisory cost hint for XLA scheduling around the custom call.
    flops = int(2 * n2 * (D * C + C * K) + 12 * n2 * K)
    transcendentals = int(3 * n2 * K + 4 * n2)
    bytes_accessed = int(4 * (x.size + w_head.size + b_head.size + w_code_v.size) + 4 * N)

    vmem = pl.BlockSpec(memory_space=pltpu.MemorySpace.VMEM)
    out = pl.pallas_call(
        _spin_kernel,
        out_shape=jax.ShapeDtypeStruct((B, T), jnp.float32),
        in_specs=[vmem, vmem, vmem, vmem],
        out_specs=vmem,
        compiler_params=pltpu.CompilerParams(vmem_limit_bytes=32 * 1024 * 1024),
        cost_estimate=pl.CostEstimate(flops=flops,
                                      transcendentals=transcendentals,
                                      bytes_accessed=bytes_accessed),
    )(x, w_head, b_head.reshape(1, C), w_code_v)
    return out.reshape(N)


def spin_reference(x, w_head, b_head, w_code_v):
    """Pure-JAX mirror of the PyTorch forward (literal sinkhorn), with the same
    bf16 matmul-operand casting as the kernel so the comparison is apples-to-apples."""
    twoB, T, D = x.shape
    C = w_head.shape[1]
    h = jnp.dot(x.reshape(-1, D).astype(jnp.bfloat16),
                w_head.astype(jnp.bfloat16),
                preferred_element_type=jnp.float32).reshape(twoB, T, C) + b_head
    nrm = jnp.sqrt(jnp.sum(h * h, axis=1, keepdims=True))
    h = h / jnp.maximum(nrm, 1e-12)
    wc = w_code_v / jnp.linalg.norm(w_code_v, axis=0, keepdims=True)
    z = jnp.dot(h.reshape(-1, C).astype(jnp.bfloat16), wc.astype(jnp.bfloat16),
                preferred_element_type=jnp.float32).reshape(twoB, T, -1)
    K = z.shape[-1]
    z1 = z[0::2].reshape(-1, K)
    z2 = z[1::2].reshape(-1, K)
    log_p1 = jax.nn.log_softmax(z1 / TEMPERATURE, axis=1)
    log_p2 = jax.nn.log_softmax(z2 / TEMPERATURE, axis=1)

    def sk(zz):
        Q = jnp.exp(zz / EPSILON).T          # literal torch algorithm (no max-sub)
        K_, Bn = Q.shape
        Q = Q / jnp.sum(Q)
        for _ in range(SINKHORN_ITERS):
            Q = Q / jnp.sum(Q, axis=1, keepdims=True)
            Q = Q / K_
            Q = Q / jnp.sum(Q, axis=0, keepdims=True)
            Q = Q / Bn
        return (Q * Bn).T

    q1, q2 = sk(z1), sk(z2)
    return -0.5 * (jnp.sum(q1 * log_p2, axis=1) + jnp.sum(q2 * log_p1, axis=1))


if __name__ == "__main__":
    # Small, TPU-friendly sizes consistent with the module: x is (2B, T, inp_dim).
    B, T, D, C, K = 2, 8, 32, 32, 256

    key = jax.random.PRNGKey(0)
    k1, k2, k3, k4 = jax.random.split(key, 4)

    # nn.Linear default init: U(-1/sqrt(fan_in), 1/sqrt(fan_in))
    bh = 1.0 / np.sqrt(D)
    w_head = jax.random.uniform(k1, (D, C), jnp.float32, -bh, bh)
    b_head = jax.random.uniform(k2, (C,), jnp.float32, -bh, bh)
    bc = 1.0 / np.sqrt(C)
    w_code_v = jax.random.uniform(k3, (C, K), jnp.float32, -bc, bc)  # un-normalized v

    x = jax.random.normal(k4, (2 * B, T, D), jnp.float32)

    out = spin_forward(x, w_head, b_head, w_code_v)
    out = jax.block_until_ready(out)

    ref = spin_reference(x, w_head, b_head, w_code_v)
    # exp(z/eps) with eps=0.02 amplifies bf16-level rounding of the matmul
    # operands and the approx reciprocals, so the tolerance is wider than a
    # pure-f32 comparison would need; real bugs show up as O(1) differences.
    np.testing.assert_allclose(np.asarray(out), np.asarray(ref), rtol=2e-2, atol=2e-4)
    assert out.shape == (B * T,)
    assert np.all(np.isfinite(np.asarray(out)))
    print("KERNEL_OK")
</pallas_src>

<mosaic_0001>
module attributes {stable_mosaic.version = 11 : i64} {
  func.func @_spin_kernel(%arg0: memref<4x8x32xf32, #tpu.memory_space<vmem>>, %arg1: memref<32x32xf32, #tpu.memory_space<vmem>>, %arg2: memref<1x32xf32, #tpu.memory_space<vmem>>, %arg3: memref<32x256xf32, #tpu.memory_space<vmem>>, %arg4: memref<2x8xf32, #tpu.memory_space<vmem>>) attributes {dimension_semantics = [], scalar_prefetch = 0 : i64, scratch_operands = 0 : i64, tpu.core_type = #tpu.core_type<tc>} {
    %c0 = arith.constant 0 : index
    %c0_0 = arith.constant 0 : index
    %0 = vector.load %arg3[%c0, %c0_0] : memref<32x256xf32, #tpu.memory_space<vmem>>, vector<32x256xf32>
    %1 = arith.mulf %0, %0 : vector<32x256xf32>
    %cst = arith.constant dense<0.000000e+00> : vector<256xf32>
    %2 = vector.multi_reduction <add>, %1, %cst [0] : vector<32x256xf32> to vector<256xf32>
    %3 = vector.shape_cast %2 : vector<256xf32> to vector<1x256xf32>
    %4 = math.rsqrt %3 : vector<1x256xf32>
    %5 = vector.broadcast %4 : vector<1x256xf32> to vector<32x256xf32>
    %6 = arith.mulf %0, %5 : vector<32x256xf32>
    %c0_1 = arith.constant 0 : index
    %c0_2 = arith.constant 0 : index
    %c0_3 = arith.constant 0 : index
    %7 = vector.load %arg0[%c0_1, %c0_2, %c0_3] : memref<4x8x32xf32, #tpu.memory_space<vmem>>, vector<4x8x32xf32>
    %8 = vector.shape_cast %7 : vector<4x8x32xf32> to vector<32x32xf32>
    %9 = arith.truncf %8 : vector<32x32xf32> to vector<32x32xbf16>
    %c0_4 = arith.constant 0 : index
    %c0_5 = arith.constant 0 : index
    %10 = vector.load %arg1[%c0_4, %c0_5] : memref<32x32xf32, #tpu.memory_space<vmem>>, vector<32x32xf32>
    %11 = arith.truncf %10 : vector<32x32xf32> to vector<32x32xbf16>
    %cst_6 = arith.constant dense<0.000000e+00> : vector<32x32xf32>
    %12 = tpu.matmul %9, %11, %cst_6 {dimension_numbers = #tpu.dot_dimension_numbers<[1], [0], [0], [1], [0, 0, 1, 1], [], []>} : vector<32x32xbf16>, vector<32x32xbf16>, vector<32x32xf32> -> vector<32x32xf32>
    %c0_7 = arith.constant 0 : index
    %c0_8 = arith.constant 0 : index
    %13 = vector.load %arg2[%c0_7, %c0_8] : memref<1x32xf32, #tpu.memory_space<vmem>>, vector<1x32xf32>
    %14 = vector.broadcast %13 : vector<1x32xf32> to vector<32x32xf32>
    %15 = arith.addf %12, %14 : vector<32x32xf32>
    %16 = vector.shape_cast %15 : vector<32x32xf32> to vector<4x8x32xf32>
    %17 = arith.mulf %16, %16 : vector<4x8x32xf32>
    %cst_9 = arith.constant dense<0.000000e+00> : vector<4x32xf32>
    %18 = vector.multi_reduction <add>, %17, %cst_9 [1] : vector<4x8x32xf32> to vector<4x32xf32>
    %19 = vector.shape_cast %18 : vector<4x32xf32> to vector<4x1x32xf32>
    %cst_10 = arith.constant 1.000000e-24 : f32
    %20 = vector.broadcast %cst_10 : f32 to vector<4x1x32xf32>
    %21 = arith.maximumf %19, %20 : vector<4x1x32xf32>
    %22 = math.rsqrt %21 : vector<4x1x32xf32>
    %23 = vector.broadcast %22 : vector<4x1x32xf32> to vector<4x8x32xf32>
    %24 = arith.mulf %16, %23 : vector<4x8x32xf32>
    %25 = vector.shape_cast %24 : vector<4x8x32xf32> to vector<32x32xf32>
    %26 = arith.truncf %25 : vector<32x32xf32> to vector<32x32xbf16>
    %27 = arith.truncf %6 : vector<32x256xf32> to vector<32x256xbf16>
    %cst_11 = arith.constant dense<0.000000e+00> : vector<32x256xf32>
    %28 = tpu.matmul %26, %27, %cst_11 {dimension_numbers = #tpu.dot_dimension_numbers<[1], [0], [0], [1], [0, 0, 1, 1], [], []>} : vector<32x32xbf16>, vector<32x256xbf16>, vector<32x256xf32> -> vector<32x256xf32>
    %cst_12 = arith.constant 1.000000e+01 : f32
    %29 = vector.broadcast %cst_12 : f32 to vector<32x256xf32>
    %30 = arith.mulf %28, %29 : vector<32x256xf32>
    %cst_13 = arith.constant dense<0xFF800000> : vector<32xf32>
    %31 = vector.multi_reduction <maximumf>, %30, %cst_13 [1] : vector<32x256xf32> to vector<32xf32>
    %32 = vector.shape_cast %31 : vector<32xf32> to vector<32x1xf32>
    %33 = vector.broadcast %32 : vector<32x1xf32> to vector<32x256xf32>
    %34 = arith.subf %30, %33 : vector<32x256xf32>
    %35 = math.exp %34 : vector<32x256xf32>
    %36 = vector.broadcast %32 : vector<32x1xf32> to vector<32x256xf32>
    %37 = arith.subf %30, %36 : vector<32x256xf32>
    %cst_14 = arith.constant dense<0.000000e+00> : vector<32xf32>
    %38 = vector.multi_reduction <add>, %35, %cst_14 [1] : vector<32x256xf32> to vector<32xf32>
    %39 = vector.shape_cast %38 : vector<32xf32> to vector<32x1xf32>
    %40 = math.log %39 : vector<32x1xf32>
    %41 = vector.broadcast %40 : vector<32x1xf32> to vector<32x256xf32>
    %42 = arith.subf %37, %41 : vector<32x256xf32>
    %43 = vector.shape_cast %28 : vector<32x256xf32> to vector<2x2x8x256xf32>
    %cst_15 = arith.constant 5.000000e+01 : f32
    %44 = vector.broadcast %cst_15 : f32 to vector<2x2x8x256xf32>
    %45 = arith.mulf %43, %44 : vector<2x2x8x256xf32>
    %cst_16 = arith.constant dense<0xFF800000> : vector<2x2x256xf32>
    %46 = vector.multi_reduction <maximumf>, %45, %cst_16 [2] : vector<2x2x8x256xf32> to vector<2x2x256xf32>
    %47 = vector.shape_cast %46 : vector<2x2x256xf32> to vector<2x2x1x256xf32>
    %cst_17 = arith.constant dense<0xFF800000> : vector<2x1x256xf32>
    %48 = vector.multi_reduction <maximumf>, %47, %cst_17 [0] : vector<2x2x1x256xf32> to vector<2x1x256xf32>
    %49 = vector.shape_cast %48 : vector<2x1x256xf32> to vector<1x2x1x256xf32>
    %50 = vector.broadcast %49 : vector<1x2x1x256xf32> to vector<2x2x8x256xf32>
    %51 = arith.subf %45, %50 : vector<2x2x8x256xf32>
    %52 = math.exp %51 : vector<2x2x8x256xf32>
    %cst_18 = arith.constant dense<0.000000e+00> : vector<2x2x256xf32>
    %53 = vector.multi_reduction <add>, %52, %cst_18 [2] : vector<2x2x8x256xf32> to vector<2x2x256xf32>
    %54 = vector.shape_cast %53 : vector<2x2x256xf32> to vector<2x2x1x256xf32>
    %cst_19 = arith.constant dense<0.000000e+00> : vector<2x1x256xf32>
    %55 = vector.multi_reduction <add>, %54, %cst_19 [0] : vector<2x2x1x256xf32> to vector<2x1x256xf32>
    %56 = vector.shape_cast %55 : vector<2x1x256xf32> to vector<1x2x1x256xf32>
    %57 = tpu.reciprocal %56 {approx = true} : vector<1x2x1x256xf32> -> vector<1x2x1x256xf32>
    %58 = vector.broadcast %57 : vector<1x2x1x256xf32> to vector<2x2x8x256xf32>
    %59 = arith.mulf %52, %58 : vector<2x2x8x256xf32>
    %cst_20 = arith.constant dense<0.000000e+00> : vector<2x2x8xf32>
    %60 = vector.multi_reduction <add>, %59, %cst_20 [3] : vector<2x2x8x256xf32> to vector<2x2x8xf32>
    %61 = vector.shape_cast %60 : vector<2x2x8xf32> to vector<2x2x8x1xf32>
    %cst_21 = arith.constant 1.000000e-30 : f32
    %62 = vector.broadcast %cst_21 : f32 to vector<2x2x8x1xf32>
    %63 = arith.maximumf %61, %62 : vector<2x2x8x1xf32>
    %64 = tpu.reciprocal %63 {approx = true} : vector<2x2x8x1xf32> -> vector<2x2x8x1xf32>
    %65 = vector.broadcast %64 : vector<2x2x8x1xf32> to vector<2x2x8x256xf32>
    %66 = arith.mulf %59, %65 : vector<2x2x8x256xf32>
    %cst_22 = arith.constant dense<0.000000e+00> : vector<2x2x256xf32>
    %67 = vector.multi_reduction <add>, %66, %cst_22 [2] : vector<2x2x8x256xf32> to vector<2x2x256xf32>
    %68 = vector.shape_cast %67 : vector<2x2x256xf32> to vector<2x2x1x256xf32>
    %cst_23 = arith.constant dense<0.000000e+00> : vector<2x1x256xf32>
    %69 = vector.multi_reduction <add>, %68, %cst_23 [0] : vector<2x2x1x256xf32> to vector<2x1x256xf32>
    %70 = vector.shape_cast %69 : vector<2x1x256xf32> to vector<1x2x1x256xf32>
    %71 = tpu.reciprocal %70 {approx = true} : vector<1x2x1x256xf32> -> vector<1x2x1x256xf32>
    %72 = vector.broadcast %71 : vector<1x2x1x256xf32> to vector<2x2x8x256xf32>
    %73 = arith.mulf %66, %72 : vector<2x2x8x256xf32>
    %cst_24 = arith.constant dense<0.000000e+00> : vector<2x2x8xf32>
    %74 = vector.multi_reduction <add>, %73, %cst_24 [3] : vector<2x2x8x256xf32> to vector<2x2x8xf32>
    %75 = vector.shape_cast %74 : vector<2x2x8xf32> to vector<2x2x8x1xf32>
    %cst_25 = arith.constant 1.000000e-30 : f32
    %76 = vector.broadcast %cst_25 : f32 to vector<2x2x8x1xf32>
    %77 = arith.maximumf %75, %76 : vector<2x2x8x1xf32>
    %78 = tpu.reciprocal %77 {approx = true} : vector<2x2x8x1xf32> -> vector<2x2x8x1xf32>
    %79 = vector.broadcast %78 : vector<2x2x8x1xf32> to vector<2x2x8x256xf32>
    %80 = arith.mulf %73, %79 : vector<2x2x8x256xf32>
    %cst_26 = arith.constant dense<0.000000e+00> : vector<2x2x256xf32>
    %81 = vector.multi_reduction <add>, %80, %cst_26 [2] : vector<2x2x8x256xf32> to vector<2x2x256xf32>
    %82 = vector.shape_cast %81 : vector<2x2x256xf32> to vector<2x2x1x256xf32>
    %cst_27 = arith.constant dense<0.000000e+00> : vector<2x1x256xf32>
    %83 = vector.multi_reduction <add>, %82, %cst_27 [0] : vector<2x2x1x256xf32> to vector<2x1x256xf32>
    %84 = vector.shape_cast %83 : vector<2x1x256xf32> to vector<1x2x1x256xf32>
    %85 = tpu.reciprocal %84 {approx = true} : vector<1x2x1x256xf32> -> vector<1x2x1x256xf32>
    %86 = vector.broadcast %85 : vector<1x2x1x256xf32> to vector<2x2x8x256xf32>
    %87 = arith.mulf %80, %86 : vector<2x2x8x256xf32>
    %cst_28 = arith.constant dense<0.000000e+00> : vector<2x2x8xf32>
    %88 = vector.multi_reduction <add>, %87, %cst_28 [3] : vector<2x2x8x256xf32> to vector<2x2x8xf32>
    %89 = vector.shape_cast %88 : vector<2x2x8xf32> to vector<2x2x8x1xf32>
    %cst_29 = arith.constant 1.000000e-30 : f32
    %90 = vector.broadcast %cst_29 : f32 to vector<2x2x8x1xf32>
    %91 = arith.maximumf %89, %90 : vector<2x2x8x1xf32>
    %92 = tpu.reciprocal %91 {approx = true} : vector<2x2x8x1xf32> -> vector<2x2x8x1xf32>
    %93 = vector.broadcast %92 : vector<2x2x8x1xf32> to vector<2x2x8x256xf32>
    %94 = arith.mulf %87, %93 : vector<2x2x8x256xf32>
    %95 = vector.shape_cast %42 : vector<32x256xf32> to vector<2x2x8x256xf32>
    %96 = vector.extract_strided_slice %94 {offsets = [0, 0, 0, 0], sizes = [2, 1, 8, 256], strides = [1, 1, 1, 1]} : vector<2x2x8x256xf32> to vector<2x1x8x256xf32>
    %97 = vector.shape_cast %96 : vector<2x1x8x256xf32> to vector<2x8x256xf32>
    %98 = vector.extract_strided_slice %95 {offsets = [0, 1, 0, 0], sizes = [2, 1, 8, 256], strides = [1, 1, 1, 1]} : vector<2x2x8x256xf32> to vector<2x1x8x256xf32>
    %99 = vector.shape_cast %98 : vector<2x1x8x256xf32> to vector<2x8x256xf32>
    %100 = arith.mulf %97, %99 : vector<2x8x256xf32>
    %cst_30 = arith.constant dense<0.000000e+00> : vector<2x8xf32>
    %101 = vector.multi_reduction <add>, %100, %cst_30 [2] : vector<2x8x256xf32> to vector<2x8xf32>
    %102 = vector.extract_strided_slice %94 {offsets = [0, 1, 0, 0], sizes = [2, 1, 8, 256], strides = [1, 1, 1, 1]} : vector<2x2x8x256xf32> to vector<2x1x8x256xf32>
    %103 = vector.shape_cast %102 : vector<2x1x8x256xf32> to vector<2x8x256xf32>
    %104 = vector.extract_strided_slice %95 {offsets = [0, 0, 0, 0], sizes = [2, 1, 8, 256], strides = [1, 1, 1, 1]} : vector<2x2x8x256xf32> to vector<2x1x8x256xf32>
    %105 = vector.shape_cast %104 : vector<2x1x8x256xf32> to vector<2x8x256xf32>
    %106 = arith.mulf %103, %105 : vector<2x8x256xf32>
    %cst_31 = arith.constant dense<0.000000e+00> : vector<2x8xf32>
    %107 = vector.multi_reduction <add>, %106, %cst_31 [2] : vector<2x8x256xf32> to vector<2x8xf32>
    %108 = arith.addf %101, %107 : vector<2x8xf32>
    %cst_32 = arith.constant -5.000000e-01 : f32
    %109 = vector.broadcast %cst_32 : f32 to vector<2x8xf32>
    %110 = arith.mulf %109, %108 : vector<2x8xf32>
    %c0_33 = arith.constant 0 : index
    %c0_34 = arith.constant 0 : index
    %111 = vector.load %arg4[%c0_33, %c0_34] : memref<2x8xf32, #tpu.memory_space<vmem>>, vector<2x8xf32>
    tpu.vector_store %arg4[%c0_33, %c0_34], %110 {strides = array<i32>} : memref<2x8xf32, #tpu.memory_space<vmem>>, vector<2x8xf32>,
    return
  }
}

</mosaic_0001>

<bundles_post_ra>
// kernel: tpu_custom_call.1
= control target key start
LH: loop header
LB: loop body
LE: loop exit
PB: predicated region body
PF: predicated region fallthrough
CT: control target
= control target key end

     0   :  { %9 = vsyncpa [#allocation3], 0  ;;  %s1290_s0 = inlined_call_operand.hbm [shape: f32[4,8,32], index: 0, kind: input, shape index: {}]   ;;  %s1291_s1 = inlined_call_operand.hbm [shape: f32[32,32], index: 1, kind: input, shape index: {}]   ;;  %s1292_s2 = inlined_call_operand.vmem [shape: f32[1,32], index: 2, kind: input, shape index: {}]   ;;  %s1293_s3 = inlined_call_operand.hbm [shape: f32[32,256], index: 3, kind: input, shape index: {}]   ;;  %s1294_s4 = inlined_call_operand.hbm [shape: f32[2,8], index: 4, kind: output, shape index: {}]  }
   0x1   :  { %10 = vsyncpa [#allocation6], 0 }
   0x2   :  { %11 = vsyncpa [#allocation4], 0  ;;  %s29_s17 = sshll.u32 %s1291_s1, 4  ;;  %s1004_s18 = smov [#allocation5]   ;;  %s30_s17 = int_to_ptr.hbm [resolvable:$true] %s29_s17 }
   0x3   :  { %s31_s19 = sshll.u32 %s1004_s18, 4  ;;  %s16_s22 = sshll.u32 %s1290_s0, 4  ;;  %s32_s19 = int_to_ptr.vmem [resolvable:$true] %s31_s19  ;;  %s17_s22 = int_to_ptr.hbm [resolvable:$true] %s16_s22 }
   0x4   :  { %s1005_s23 = smov 128   ;;  %s1006_s24 = smov 8  }
   0x5   :  { %37 = dma.hbm_to_vmem [thread:$0]  %s30_s17, 512, %s32_s19, [#allocation6], %s1005_s23, %s1005_s23, %s1006_s24  }
   0x6   :  { %s1007_s25 = smov [#allocation2]   ;;  %s44_s29 = sshll.u32 %s1293_s3, 4  ;;  %s45_s29 = int_to_ptr.hbm [resolvable:$true] %s44_s29 }
   0x7   :  { %s18_s26 = sshll.u32 %s1007_s25, 4  ;;  %s1008_s1 = smov [#allocation7]   ;;  %s19_s26 = int_to_ptr.vmem [resolvable:$true] %s18_s26 }
   0x8   :  { %24 = dma.hbm_to_vmem [thread:$0]  %s17_s22, 512, %s19_s26, [#allocation3], %s1005_s23, %s1005_s23, %s1006_s24  }
   0x9   :  { %s46_s30 = sshll.u32 %s1008_s1, 4  ;;  %s1009_s5 = smov 256   ;;  %s47_s30 = int_to_ptr.vmem [resolvable:$true] %s46_s30 }
   0xa   :  { %s1010_s6 = smov 16  }
   0xb   :  { %52 = dma.hbm_to_vmem [thread:$0]  %s45_s29, 1024, %s47_s30, [#allocation6], %s1009_s5, %s1009_s5, %s1010_s6  }
   0xc   :  { %998 = dma.done.wait [#allocation3], 512  }
   0xd   :  { %999 = vsyncadd [#allocation3], 4294966784 }
   0xe   :  { %1000 = dma.done.wait [#allocation6], 1536  }
   0xf   :  { %1001 = vsyncadd [#allocation6], 4294965760  ;;  %v136_v0 = vld [vmem:[#allocation5 + $0x10] sm:$0xff]  ;;  %v137_v1 = vld [vmem:[#allocation5 + $0x18] sm:$0xff]  ;;  %vm144_vm0 = vcmask 261120   ;;  %s774_s10 = sshll.u32 %s1294_s4, 4  ;;  %s775_s10 = int_to_ptr.hbm [resolvable:$true] %s774_s10 }
  0x10   :  { %v134_v2 = vld [vmem:[#allocation5] sm:$0xff]  ;;  %v139_v3 = vpack.c.bf16 %v137_v1, %v136_v0  ;;  %v135_v4 = vld [vmem:[#allocation5 + $0x8] sm:$0xff]  ;;  %v130_v8 = vld [vmem:[#allocation2 + $0x10] sm:$0xff] }
  0x11   :  { %v128_v5 = vld [vmem:[#allocation2] sm:$0xff]  ;;  %v138_v6 = vpack.c.bf16 %v135_v4, %v134_v2  ;;  %v129_v7 = vld [vmem:[#allocation2 + $0x8] sm:$0xff]  ;;  %v131_v9 = vld [vmem:[#allocation2 + $0x18] sm:$0xff] }
  0x12   :  { %157 = vmatpush.bf16.msra.mxu0 %v139_v3  ;;  %791 = vmatpush.bf16.msra.mxu3 %v139_v3  ;;  %v132_v10 = vpack.c.bf16 %v129_v7, %v128_v5  ;;  %v133_v11 = vpack.c.bf16 %v131_v9, %v130_v8  ;;  %v1048_v12 = vld [vmem:[#allocation7] sm:$0xff]  ;;  %v1050_v13 = vld [vmem:[#allocation7 + $0x10] sm:$0xff]  ;;  %v1052_v14 = vld [vmem:[#allocation7 + $0x8] sm:$0xff] }
  0x13   :  { %v74_v15 = vmul.f32 %v1048_v12, %v1048_v12  ;;  %v76_v16 = vmul.f32 %v1050_v13, %v1050_v13  ;;  %v1058_v17 = vld [vmem:[#allocation7 + $0x18] sm:$0xff]  ;;  %v75_v18 = vmul.f32 %v1052_v14, %v1052_v14  ;;  %v70_v19 = vld [vmem:[#allocation7 + $0x20] sm:$0xff]  ;;  %v1062_v20 = vld [vmem:[#allocation7 + $0x28] sm:$0xff] }
  0x14   :  { %v77_v21 = vmul.f32 %v1058_v17, %v1058_v17  ;;  %v78_v22 = vmul.f32 %v70_v19, %v70_v19  ;;  %v79_v24 = vmul.f32 %v1062_v20, %v1062_v20  ;;  %v72_v25 = vld [vmem:[#allocation7 + $0x30] sm:$0xff]  ;;  %v1068_v26 = vld [vmem:[#allocation7 + $0x38] sm:$0xff]  ;;  %v801_v47 = vld [vmem:[%s1292_s2] ss:$0 sm:$0xff]  ;;  %s1011_s2 = smov [#allocation8]  }
  0x15   :  { %v82_v23 = vadd.f32 %v76_v16, %v74_v15  ;;  %v80_v28 = vmul.f32 %v72_v25, %v72_v25  ;;  %v81_v30 = vmul.f32 %v1068_v26, %v1068_v26  ;;  %s772_s7 = sshll.u32 %s1011_s2, 4  ;;  %s773_s7 = int_to_ptr.vmem [resolvable:$true] %s772_s7 }
  0x16   :  { %158 = vmatpush.bf16.msra.mxu0 %v138_v6  ;;  %792 = vmatpush.bf16.msra.mxu3 %v138_v6  ;;  %v91_v27 = vadd.f32 %v77_v21, %v75_v18 }
  0x17   :  { %v83_v29 = vadd.f32 %v82_v23, %v78_v22 }
  0x18   :  { %v92_v31 = vadd.f32 %v91_v27, %v79_v24 }
  0x19   :  { %785 = vmatmul.msk.bf16.vlgmr.msra.gmra.mxu0 %vm144_vm0, %v132_v10  ;;  %786 = vmatmul.msk.bf16.vlgmr.msra.gmra.mxu3 %vm144_vm0, %v133_v11  ;;  %v84_v32 = vadd.f32 %v83_v29, %v80_v28 }
  0x1a   :  { %v93_v33 = vadd.f32 %v92_v31, %v81_v30 }
  0x1b   :  { %v85_v34 = vrot.slane %v84_v32, 4 }
  0x1c   :  { %v94_v35 = vrot.slane %v93_v33, 4 }
  0x1d   :  { %v86_v36 = vadd.f32 %v85_v34, %v84_v32 }
  0x1e   :  { %v95_v37 = vadd.f32 %v94_v35, %v93_v33 }
  0x1f   :  { %v87_v38 = vrot.slane %v86_v36, 2 }
  0x20   :  { %v96_v39 = vrot.slane %v95_v37, 2 }
  0x21   :  { %v88_v40 = vadd.f32 %v87_v38, %v86_v36 }
  0x22   :  { %v97_v41 = vadd.f32 %v96_v39, %v95_v37 }
  0x23   :  { %v89_v42 = vrot.slane %v88_v40, 1 }
  0x24   :  { %v98_v43 = vrot.slane %v97_v41, 1 }
  0x25   :  { %v90_v44 = vadd.f32 %v89_v42, %v88_v40 }
  0x26   :  { %v99_v45 = vadd.f32 %v98_v43, %v97_v41 }
  0x27   :  { %802 = vrsqrt.f32 %v90_v44  ;;  %vm106_vm1 = vweird.f32 %v90_v44 }
  0x28   :  { %804 = vrsqrt.f32 %v99_v45  ;;  %vm116_vm4 = vweird.f32 %v99_v45 }
  0x2d   :  { %v803_v46 = vpop.eup %802 }
  0x2e   :  { %v805_v48 = vpop.eup %804  ;;  %v101_v49 = vmul.f32 %v803_v46, %v90_v44  ;;  %vm107_vm2 = vweird.f32 %v803_v46 }
  0x2f   :  { %v111_v50 = vmul.f32 %v805_v48, %v99_v45  ;;  %vm108_vm3 = vmor %vm106_vm1, %vm107_vm2  ;;  %vm117_vm5 = vweird.f32 %v805_v48 }
  0x30   :  { %v102_v52 = vmul.f32 %v803_v46, %v101_v49  ;;  %vm118_vm6 = vmor %vm116_vm4, %vm117_vm5  ;;  %vm765_vm4 = vcmask 58368  }
  0x31   :  { %v112_v54 = vmul.f32 %v805_v48, %v111_v50 }
  0x32   :  { %v103_v55 = vmul.f32 0.5, %v102_v52 }
  0x33   :  { %v113_v57 = vmul.f32 0.5, %v112_v54 }
  0x34   :  { %v104_v58 = vsub.f32 1.5, %v103_v55 }
  0x35   :  { %v114_v60 = vsub.f32 1.5, %v113_v57 }
  0x36   :  { %v105_v63 = vmul.f32 %v803_v46, %v104_v58 }
  0x37   :  { %v115_v1 = vmul.f32 %v805_v48, %v114_v60 }
  0x38   :  { %v109_v4 = vsel %vm108_vm3, %v803_v46, %v105_v63 }
  0x39   :  { %v124_v7 = vmul.f32 %v109_v4, %v70_v19  ;;  %v126_v8 = vmul.f32 %v109_v4, %v72_v25  ;;  %v119_v10 = vsel %vm118_vm6, %v805_v48, %v115_v1  ;;  %v120_v19 = vmul.f32 %v109_v4, %v1048_v12 }
  0x3a   :  { %v125_v18 = vmul.f32 %v119_v10, %v1062_v20  ;;  %v127_v23 = vmul.f32 %v119_v10, %v1068_v26  ;;  %v122_v25 = vmul.f32 %v109_v4, %v1050_v13  ;;  %v121_v27 = vmul.f32 %v119_v10, %v1052_v14 }
  0x3b   :  { %v254_v16 = vpack.c.bf16 %v126_v8, %v124_v7  ;;  %v123_v34 = vmul.f32 %v119_v10, %v1058_v17 }
  0x3c   :  { %v255_v32 = vpack.c.bf16 %v127_v23, %v125_v18  ;;  %v252_v20 = vpack.c.bf16 %v122_v25, %v120_v19 }
  0x3d   :  { %268 = vmatpush.bf16.msra.mxu1 %v254_v16  ;;  %v253_v13 = vpack.c.bf16 %v123_v34, %v121_v27 }
  0x3e   :  { %287 = vmatpush.bf16.msra.mxu2 %v255_v32 }
  0x41   :  { %269 = vmatpush.bf16.msra.mxu1 %v252_v20 }
  0x42   :  { %288 = vmatpush.bf16.msra.mxu2 %v253_v13 }
  0x96   :  { %v160_v51 = vpop.f32.mrf.mxu0 }
  0x97   :  { %v1075_v53 = vadd.f32 %v801_v47, %v160_v51 }
  0x99   :  { %v170_v56 = vmul.f32 %v1075_v53, %v1075_v53 }
  0x9b   :  { %v174_v59 = vsel %vm144_vm0, %v170_v56, 0.0 }
  0x9c   :  { %v175_v61 = vrot.slane %v174_v59, 4  ;;  %v165_v62 = vpop.f32.mrf.mxu3 }
  0x9d   :  { %v1080_v0 = vadd.f32 %v801_v47, %v165_v62 }
  0x9e   :  { %v176_v2 = vadd.f32 %v175_v61, %v174_v59  ;;  %v162_v3 = vpop.f32.mrf.mxu0 }
  0x9f   :  { %v172_v5 = vmul.f32 %v1080_v0, %v1080_v0  ;;  %v1084_v6 = vadd.f32 %v801_v47, %v162_v3 }
  0xa0   :  { %v177_v9 = vrot.slane %v176_v2, 2 }
  0xa1   :  { %v188_v11 = vsel %vm144_vm0, %v172_v5, 0.0  ;;  %v171_v15 = vmul.f32 %v1084_v6, %v1084_v6 }
  0xa2   :  { %v178_v21 = vadd.f32 %v177_v9, %v176_v2  ;;  %v189_v22 = vrot.slane %v188_v11, 4 }
  0xa3   :  { %v181_v24 = vsel %vm144_vm0, %v171_v15, 0.0 }
  0xa4   :  { %v179_v28 = vrot.slane %v178_v21, 1  ;;  %v190_v29 = vadd.f32 %v189_v22, %v188_v11  ;;  %v182_v30 = vrot.slane %v181_v24, 4  ;;  %v167_v31 = vpop.f32.mrf.mxu3 }
  0xa5   :  { %v1095_v33 = vadd.f32 %v801_v47, %v167_v31 }
  0xa6   :  { %v180_v26 = vadd.f32 %v179_v28, %v178_v21  ;;  %v191_v35 = vrot.slane %v190_v29, 2  ;;  %v183_v36 = vadd.f32 %v182_v30, %v181_v24 }
  0xa7   :  { %v173_v12 = vmul.f32 %v1095_v33, %v1095_v33 }
  0xa8   :  { %v202_v14 = vmax.f32 %v180_v26, 1e-24  ;;  %v192_v37 = vadd.f32 %v191_v35, %v190_v29  ;;  %v184_v38 = vrot.slane %v183_v36, 2 }
  0xa9   :  { %v195_v39 = vsel %vm144_vm0, %v173_v12, 0.0 }
  0xaa   :  { %806 = vrsqrt.f32 %v202_v14  ;;  %v193_v40 = vrot.slane %v192_v37, 1  ;;  %v185_v41 = vadd.f32 %v184_v38, %v183_v36  ;;  %v196_v42 = vrot.slane %v195_v39, 4 }
  0xab   :  { %vm212_vm8 = vweird.f32 %v202_v14 }
  0xac   :  { %v194_v17 = vadd.f32 %v193_v40, %v192_v37  ;;  %v186_v43 = vrot.slane %v185_v41, 1  ;;  %v197_v44 = vadd.f32 %v196_v42, %v195_v39 }
  0xae   :  { %v187_v45 = vadd.f32 %v186_v43, %v185_v41  ;;  %v198_v46 = vrot.slane %v197_v44, 2  ;;  %v204_v48 = vmax.f32 %v194_v17, 1e-24 }
  0xb0   :  { %v807_v47 = vpop.eup %806  ;;  %v203_v49 = vmax.f32 %v187_v45, 1e-24  ;;  %v199_v51 = vadd.f32 %v198_v46, %v197_v44  ;;  %vm232_vm2 = vweird.f32 %v204_v48 }
  0xb1   :  { %v207_v50 = vmul.f32 %v807_v47, %v202_v14  ;;  %vm213_vm7 = vweird.f32 %v807_v47 }
  0xb2   :  { %808 = vrsqrt.f32 %v203_v49  ;;  %v200_v54 = vrot.slane %v199_v51, 1  ;;  %vm214_vm10 = vmor %vm212_vm8, %vm213_vm7  ;;  %vm222_vm11 = vweird.f32 %v203_v49 }
  0xb3   :  { %v208_v52 = vmul.f32 %v807_v47, %v207_v50  ;;  %810 = vrsqrt.f32 %v204_v48 }
  0xb4   :  { %v201_v56 = vadd.f32 %v200_v54, %v199_v51 }
  0xb5   :  { %v209_v55 = vmul.f32 0.5, %v208_v52 }
  0xb6   :  { %v205_v57 = vmax.f32 %v201_v56, 1e-24 }
  0xb7   :  { %v210_v59 = vsub.f32 1.5, %v209_v55 }
  0xb8   :  { %v809_v58 = vpop.eup %808  ;;  %812 = vrsqrt.f32 %v205_v57  ;;  %vm242_vm15 = vweird.f32 %v205_v57 }
  0xb9   :  { %v217_v60 = vmul.f32 %v809_v58, %v203_v49  ;;  %v811_v61 = vpop.eup %810  ;;  %v211_v63 = vmul.f32 %v807_v47, %v210_v59  ;;  %vm223_vm9 = vweird.f32 %v809_v58 }
  0xba   :  { %v227_v1 = vmul.f32 %v811_v61, %v204_v48  ;;  %vm224_vm12 = vmor %vm222_vm11, %vm223_vm9  ;;  %vm233_vm14 = vweird.f32 %v811_v61 }
  0xbb   :  { %v218_v62 = vmul.f32 %v809_v58, %v217_v60  ;;  %v215_v5 = vsel %vm214_vm10, %v807_v47, %v211_v63  ;;  %vm234_vm3 = vmor %vm232_vm2, %vm233_vm14 }
  0xbc   :  { %v228_v7 = vmul.f32 %v811_v61, %v227_v1  ;;  %v246_v15 = vmul.f32 %v215_v5, %v1075_v53 }
  0xbd   :  { %v219_v2 = vmul.f32 0.5, %v218_v62 }
  0xbe   :  { %v813_v4 = vpop.eup %812  ;;  %v229_v18 = vmul.f32 0.5, %v228_v7 }
  0xbf   :  { %v220_v3 = vsub.f32 1.5, %v219_v2  ;;  %v237_v9 = vmul.f32 %v813_v4, %v205_v57  ;;  %vm243_vm13 = vweird.f32 %v813_v4 }
  0xc0   :  { %v230_v24 = vsub.f32 1.5, %v229_v18  ;;  %vm244_vm1 = vmor %vm242_vm15, %vm243_vm13 }
  0xc1   :  { %v221_v8 = vmul.f32 %v809_v58, %v220_v3  ;;  %v238_v11 = vmul.f32 %v813_v4, %v237_v9 }
  0xc2   :  { %v231_v25 = vmul.f32 %v811_v61, %v230_v24 }
  0xc3   :  { %v225_v10 = vsel %vm224_vm12, %v809_v58, %v221_v8  ;;  %v239_v21 = vmul.f32 0.5, %v238_v11 }
  0xc4   :  { %v247_v16 = vmul.f32 %v225_v10, %v1084_v6  ;;  %v235_v53 = vsel %vm234_vm3, %v811_v61, %v231_v25 }
  0xc5   :  { %v240_v23 = vsub.f32 1.5, %v239_v21  ;;  %v248_v28 = vmul.f32 %v235_v53, %v1080_v0 }
  0xc6   :  { %v250_v22 = vpack.c.bf16 %v247_v16, %v246_v15 }
  0xc7   :  { %v241_v19 = vmul.f32 %v813_v4, %v240_v23 }
  0xc8   :  { %787 = vmatmul.msk.bf16.vlgmr.msra.gmra.mxu1 %vm144_vm0, %v250_v22  ;;  %789 = vmatmul.msk.bf16.vlgmr.msra.gmra.mxu2 %vm144_vm0, %v250_v22 }
  0xc9   :  { %v245_v27 = vsel %vm244_vm1, %v813_v4, %v241_v19 }
  0xca   :  { %v249_v6 = vmul.f32 %v245_v27, %v1095_v33 }
  0xcc   :  { %v251_v29 = vpack.c.bf16 %v249_v6, %v248_v28 }
  0xd8   :  { %788 = vmatmul.msk.bf16.gmra.mxu1 %vm144_vm0, %v251_v29  ;;  %790 = vmatmul.msk.bf16.gmra.mxu2 %vm144_vm0, %v251_v29  ;;  %vm762_vm0 = vcmask 1041409  }
 0x145   :  { %v1109_v30 = vpop.f32.mrf.mxu1 }
 0x146   :  { %v372_v31 = vmul.f32 50.0, %v1109_v30 }
 0x148   :  { %v380_v34 = vrot.slane %v372_v31, 4 }
 0x14a   :  { %v381_v0 = vmax.f32 %v372_v31, %v380_v34 }
 0x14b   :  { %v1112_v32 = vpop.f32.mrf.mxu2 }
 0x14c   :  { %v1117_v26 = vmul.f32 50.0, %v1112_v32  ;;  %v382_v14 = vrot.slane %v381_v0, 2 }
 0x14d   :  { %v1114_v20 = vpop.f32.mrf.mxu1 }
 0x14e   :  { %v1120_v33 = vmul.f32 50.0, %v1114_v20  ;;  %v386_v36 = vrot.slane %v1117_v26, 4  ;;  %v383_v42 = vmax.f32 %v381_v0, %v382_v14 }
 0x150   :  { %v392_v13 = vrot.slane %v1120_v33, 4  ;;  %v387_v38 = vmax.f32 %v1117_v26, %v386_v36  ;;  %v384_v52 = vrot.slane %v383_v42, 1 }
 0x152   :  { %v393_v41 = vmax.f32 %v1120_v33, %v392_v13  ;;  %v388_v44 = vrot.slane %v387_v38, 2  ;;  %v385_v63 = vmax.f32 %v383_v42, %v384_v52 }
 0x153   :  { %v1122_v35 = vpop.f32.mrf.mxu2 }
 0x154   :  { %v1131_v39 = vmul.f32 50.0, %v1122_v35  ;;  %v394_v49 = vrot.slane %v393_v41, 2  ;;  %v389_v55 = vmax.f32 %v387_v38, %v388_v44 }
 0x155   :  { %v1125_v12 = vpop.f32.mrf.mxu1 }
 0x156   :  { %v376_v37 = vmul.f32 50.0, %v1125_v12  ;;  %v398_v46 = vrot.slane %v1131_v39, 4  ;;  %v395_v60 = vmax.f32 %v393_v41, %v394_v49  ;;  %v390_v3 = vrot.slane %v389_v55, 1 }
 0x158   :  { %v404_v40 = vrot.slane %v376_v37, 4  ;;  %v399_v58 = vmax.f32 %v1131_v39, %v398_v46  ;;  %v396_v10 = vrot.slane %v395_v60, 1  ;;  %v391_v22 = vmax.f32 %v389_v55, %v390_v3 }
 0x15a   :  { %v405_v17 = vmax.f32 %v376_v37, %v404_v40  ;;  %v400_v8 = vrot.slane %v399_v58, 2  ;;  %v397_v28 = vmax.f32 %v395_v60, %v396_v10 }
 0x15b   :  { %v1134_v43 = vpop.f32.mrf.mxu2 }
 0x15c   :  { %v377_v45 = vmul.f32 50.0, %v1134_v43  ;;  %v406_v47 = vrot.slane %v405_v17, 2  ;;  %v401_v25 = vmax.f32 %v399_v58, %v400_v8 }
 0x15d   :  { %v1138_v48 = vpop.f32.mrf.mxu1 }
 0x15e   :  { %v410_v50 = vrot.slane %v377_v45, 4  ;;  %v378_v51 = vmul.f32 50.0, %v1138_v48  ;;  %v407_v54 = vmax.f32 %v405_v17, %v406_v47  ;;  %v402_v14 = vrot.slane %v401_v25, 1 }
 0x160   :  { %v411_v56 = vmax.f32 %v377_v45, %v410_v50  ;;  %v416_v57 = vrot.slane %v378_v51, 4  ;;  %v408_v59 = vrot.slane %v407_v54, 1  ;;  %v403_v47 = vmax.f32 %v401_v25, %v402_v14 }
 0x162   :  { %v412_v61 = vrot.slane %v411_v56, 2  ;;  %v417_v62 = vmax.f32 %v378_v51, %v416_v57  ;;  %v409_v1 = vmax.f32 %v407_v54, %v408_v59 }
 0x163   :  { %v1142_v2 = vpop.f32.mrf.mxu2 }
 0x164   :  { %v413_v4 = vmax.f32 %v411_v56, %v412_v61  ;;  %v418_v5 = vrot.slane %v417_v62, 2  ;;  %v379_v7 = vmul.f32 50.0, %v1142_v2  ;;  %v428_v9 = vmax.f32 %v385_v63, %v409_v1 }
 0x166   :  { %v414_v11 = vrot.slane %v413_v4, 1  ;;  %v419_v15 = vmax.f32 %v417_v62, %v418_v5  ;;  %v422_v16 = vrot.slane %v379_v7, 4  ;;  %v432_v18 = vsub.f32 %v372_v31, %v428_v9 }
 0x167   :  { %v436_v21 = vsub.f32 %v376_v37, %v428_v9 }
 0x168   :  { %v415_v23 = vmax.f32 %v413_v4, %v414_v11  ;;  %v420_v24 = vrot.slane %v419_v15, 1  ;;  %v423_v19 = vmax.f32 %v379_v7, %v422_v16  ;;  %v440_v27 = vmul.f32 1.442695, %v432_v18 }
 0x169   :  { %v448_v53 = vmul.f32 1.442695, %v436_v21 }
 0x16a   :  { %v429_v6 = vmax.f32 %v391_v22, %v415_v23  ;;  %v421_v29 = vmax.f32 %v419_v15, %v420_v24  ;;  %v424_v34 = vrot.slane %v423_v19, 2  ;;  %814 = vpow2.f32 %v440_v27 }
 0x16b   :  { %816 = vpow2.f32 %v448_v53 }
 0x16c   :  { %v433_v0 = vsub.f32 %v1117_v26, %v429_v6  ;;  %v437_v36 = vsub.f32 %v377_v45, %v429_v6  ;;  %v430_v13 = vmax.f32 %v397_v28, %v421_v29  ;;  %v425_v31 = vmax.f32 %v423_v19, %v424_v34 }
 0x16e   :  { %v442_v37 = vmul.f32 1.442695, %v433_v0  ;;  %v450_v38 = vmul.f32 1.442695, %v437_v36  ;;  %v434_v40 = vsub.f32 %v1120_v33, %v430_v13  ;;  %v438_v41 = vsub.f32 %v378_v51, %v430_v13 }
 0x16f   :  { %v426_v42 = vrot.slane %v425_v31, 1 }
 0x170   :  { %818 = vpow2.f32 %v442_v37  ;;  %v444_v17 = vmul.f32 1.442695, %v434_v40  ;;  %v452_v44 = vmul.f32 1.442695, %v438_v41  ;;  %v1147_v46 = vpop.eup %814 }
 0x171   :  { %820 = vpow2.f32 %v450_v38  ;;  %v427_v49 = vmax.f32 %v425_v31, %v426_v42  ;;  %v1149_v50 = vpop.eup %816  ;;  %v456_v26 = vrot.slane %v1147_v46, 4 }
 0x172   :  { %822 = vpow2.f32 %v444_v17  ;;  %v480_v52 = vrot.slane %v1149_v50, 4 }
 0x173   :  { %824 = vpow2.f32 %v452_v44  ;;  %v431_v45 = vmax.f32 %v403_v47, %v427_v49  ;;  %v457_v33 = vadd.f32 %v1147_v46, %v456_v26 }
 0x174   :  { %v481_v55 = vadd.f32 %v1149_v50, %v480_v52 }
 0x175   :  { %v435_v51 = vsub.f32 %v1131_v39, %v431_v45  ;;  %v439_v54 = vsub.f32 %v379_v7, %v431_v45  ;;  %v458_v57 = vrot.slane %v457_v33, 2 }
 0x176   :  { %v1156_v56 = vpop.eup %818  ;;  %v482_v62 = vrot.slane %v481_v55, 2 }
 0x177   :  { %v821_v58 = vpop.eup %820  ;;  %v446_v59 = vmul.f32 1.442695, %v435_v51  ;;  %v454_v60 = vmul.f32 1.442695, %v439_v54  ;;  %v462_v61 = vrot.slane %v1156_v56, 4  ;;  %v459_v1 = vadd.f32 %v458_v57, %v457_v33 }
 0x178   :  { %v1159_v63 = vpop.eup %822  ;;  %v486_v3 = vrot.slane %v821_v58, 4  ;;  %v483_v5 = vadd.f32 %v482_v62, %v481_v55 }
 0x179   :  { %v1161_v4 = vpop.eup %824  ;;  %826 = vpow2.f32 %v446_v59  ;;  %v463_v39 = vadd.f32 %v1156_v56, %v462_v61  ;;  %v468_v7 = vrot.slane %v1159_v63, 4  ;;  %v460_v8 = vrot.slane %v459_v1, 1 }
 0x17a   :  { %828 = vpow2.f32 %v454_v60  ;;  %v487_v9 = vadd.f32 %v821_v58, %v486_v3  ;;  %v492_v10 = vrot.slane %v1161_v4, 4  ;;  %v484_v15 = vrot.slane %v483_v5, 1 }
 0x17b   :  { %v464_v11 = vrot.slane %v463_v39, 2  ;;  %v469_v16 = vadd.f32 %v1159_v63, %v468_v7  ;;  %v461_v18 = vadd.f32 %v460_v8, %v459_v1 }
 0x17c   :  { %v488_v21 = vrot.slane %v487_v9, 2  ;;  %v493_v22 = vadd.f32 %v1161_v4, %v492_v10  ;;  %v485_v24 = vadd.f32 %v484_v15, %v483_v5 }
 0x17d   :  { %v465_v23 = vadd.f32 %v464_v11, %v463_v39  ;;  %v470_v19 = vrot.slane %v469_v16, 2 }
 0x17e   :  { %v489_v25 = vadd.f32 %v488_v21, %v487_v9  ;;  %v494_v27 = vrot.slane %v493_v22, 2  ;;  %v504_v28 = vadd.f32 %v485_v24, %v461_v18 }
 0x17f   :  { %v827_v53 = vpop.eup %826  ;;  %v466_v6 = vrot.slane %v465_v23, 1  ;;  %v471_v29 = vadd.f32 %v470_v19, %v469_v16 }
 0x180   :  { %v829_v34 = vpop.eup %828  ;;  %v490_v0 = vrot.slane %v489_v25, 1  ;;  %v474_v36 = vrot.slane %v827_v53, 4  ;;  %v495_v13 = vadd.f32 %v494_v27, %v493_v22  ;;  %830 = vrcp.f32 %v504_v28 }
 0x181   :  { %v467_v14 = vadd.f32 %v466_v6, %v465_v23  ;;  %v472_v31 = vrot.slane %v471_v29, 1  ;;  %v498_v37 = vrot.slane %v829_v34, 4 }
 0x182   :  { %v491_v38 = vadd.f32 %v490_v0, %v489_v25  ;;  %v475_v40 = vadd.f32 %v827_v53, %v474_v36  ;;  %v496_v41 = vrot.slane %v495_v13, 1 }
 0x183   :  { %v499_v42 = vadd.f32 %v829_v34, %v498_v37  ;;  %v473_v47 = vadd.f32 %v472_v31, %v471_v29 }
 0x184   :  { %v505_v17 = vadd.f32 %v491_v38, %v467_v14  ;;  %v476_v44 = vrot.slane %v475_v40, 2  ;;  %v497_v49 = vadd.f32 %v496_v41, %v495_v13 }
 0x185   :  { %v500_v26 = vrot.slane %v499_v42, 2 }
 0x186   :  { %832 = vrcp.f32 %v505_v17  ;;  %v477_v45 = vadd.f32 %v476_v44, %v475_v40  ;;  %v831_v51 = vpop.eup %830  ;;  %v506_v55 = vadd.f32 %v497_v49, %v473_v47 }
 0x187   :  { %v501_v52 = vadd.f32 %v500_v26, %v499_v42  ;;  %v516_v61 = vmul.f32 %v831_v51, %v1149_v50  ;;  %v512_v62 = vmul.f32 %v831_v51, %v1147_v46 }
 0x188   :  { %v478_v33 = vrot.slane %v477_v45, 1  ;;  %834 = vrcp.f32 %v506_v55 }
 0x189   :  { %v502_v54 = vrot.slane %v501_v52, 1 }
 0x18a   :  { %v479_v57 = vadd.f32 %v478_v33, %v477_v45 }
 0x18b   :  { %v503_v59 = vadd.f32 %v502_v54, %v501_v52 }
 0x18c   :  { %v833_v60 = vpop.eup %832 }
 0x18d   :  { %v517_v1 = vmul.f32 %v833_v60, %v821_v58  ;;  %v513_v3 = vmul.f32 %v833_v60, %v1156_v56  ;;  %v507_v39 = vadd.f32 %v503_v59, %v479_v57 }
 0x18e   :  { %v835_v8 = vpop.eup %834 }
 0x18f   :  { %v526_v5 = vadd.f32 %v517_v1, %v516_v61  ;;  %v520_v7 = vadd.f32 %v513_v3, %v512_v62  ;;  %836 = vrcp.f32 %v507_v39  ;;  %v518_v10 = vmul.f32 %v835_v8, %v1161_v4 }
 0x190   :  { %v514_v15 = vmul.f32 %v835_v8, %v1159_v63 }
 0x191   :  { %527 = vadd.xlane.f32.xlu1 %v526_v5  ;;  %521 = vadd.xlane.f32.xlu0 %v520_v7 }
 0x195   :  { %v837_v9 = vpop.eup %836 }
 0x196   :  { %v519_v11 = vmul.f32 %v837_v9, %v829_v34  ;;  %v515_v50 = vmul.f32 %v837_v9, %v827_v53 }
 0x198   :  { %v529_v16 = vadd.f32 %v519_v11, %v518_v10  ;;  %v523_v46 = vadd.f32 %v515_v50, %v514_v15 }
 0x19a   :  { %530 = vadd.xlane.f32.xlu1 %v529_v16  ;;  %524 = vadd.xlane.f32.xlu0 %v523_v46 }
 0x204   :  { %v528_v56 = vpop.xlane.xlu1 %527  ;;  %v522_v58 = vpop.xlane.xlu0 %521 }
 0x205   :  { %v534_v18 = vmax.f32 %v528_v56, 1e-30  ;;  %v532_v21 = vmax.f32 %v522_v58, 1e-30 }
 0x207   :  { %838 = vrcp.f32 %v534_v18 }
 0x208   :  { %840 = vrcp.f32 %v532_v21 }
 0x20d   :  { %v839_v22 = vpop.eup %838  ;;  %v531_v23 = vpop.xlane.xlu1 %530 }
 0x20e   :  { %v525_v24 = vpop.xlane.xlu0 %524  ;;  %v841_v19 = vpop.eup %840  ;;  %v1173_v25 = vmul.f32 %v839_v22, %v516_v61  ;;  %v1175_v4 = vmul.f32 %v839_v22, %v517_v1  ;;  %v535_v63 = vmax.f32 %v531_v23, 1e-30 }
 0x20f   :  { %v533_v27 = vmax.f32 %v525_v24, 1e-30  ;;  %v1177_v53 = vmul.f32 %v841_v19, %v512_v62  ;;  %v1179_v6 = vmul.f32 %v841_v19, %v513_v3 }
 0x210   :  { %v572_v28 = vrot.slane %v1173_v25, 4  ;;  %v578_v29 = vrot.slane %v1175_v4, 4  ;;  %842 = vrcp.f32 %v535_v63 }
 0x211   :  { %844 = vrcp.f32 %v533_v27  ;;  %v548_v34 = vrot.slane %v1177_v53, 4  ;;  %v554_v0 = vrot.slane %v1179_v6, 4 }
 0x212   :  { %v573_v36 = vadd.f32 %v572_v28, %v1173_v25  ;;  %v579_v13 = vadd.f32 %v578_v29, %v1175_v4 }
 0x213   :  { %v549_v14 = vadd.f32 %v548_v34, %v1177_v53  ;;  %v555_v31 = vadd.f32 %v554_v0, %v1179_v6 }
 0x214   :  { %v574_v37 = vrot.slane %v573_v36, 2  ;;  %v580_v38 = vrot.slane %v579_v13, 2 }
 0x215   :  { %v550_v40 = vrot.slane %v549_v14, 2  ;;  %v556_v41 = vrot.slane %v555_v31, 2 }
 0x216   :  { %v843_v42 = vpop.eup %842  ;;  %v575_v17 = vadd.f32 %v574_v37, %v573_v36  ;;  %v581_v44 = vadd.f32 %v580_v38, %v579_v13 }
 0x217   :  { %v845_v47 = vpop.eup %844  ;;  %v551_v49 = vadd.f32 %v550_v40, %v549_v14  ;;  %v557_v26 = vadd.f32 %v556_v41, %v555_v31  ;;  %v546_v45 = vmul.f32 %v843_v42, %v518_v10  ;;  %v547_v52 = vmul.f32 %v843_v42, %v519_v11 }
 0x218   :  { %v542_v33 = vmul.f32 %v845_v47, %v514_v15  ;;  %v543_v51 = vmul.f32 %v845_v47, %v515_v50  ;;  %v576_v54 = vrot.slane %v575_v17, 1  ;;  %v582_v55 = vrot.slane %v581_v44, 1 }
 0x219   :  { %v552_v57 = vrot.slane %v551_v49, 1  ;;  %v558_v59 = vrot.slane %v557_v26, 1  ;;  %v584_v60 = vrot.slane %v546_v45, 4  ;;  %v590_v61 = vrot.slane %v547_v52, 4 }
 0x21a   :  { %v560_v62 = vrot.slane %v542_v33, 4  ;;  %v566_v1 = vrot.slane %v543_v51, 4  ;;  %v577_v3 = vadd.f32 %v576_v54, %v575_v17  ;;  %v583_v39 = vadd.f32 %v582_v55, %v581_v44 }
 0x21b   :  { %v553_v5 = vadd.f32 %v552_v57, %v551_v49  ;;  %v559_v7 = vadd.f32 %v558_v59, %v557_v26  ;;  %v585_v8 = vadd.f32 %v584_v60, %v546_v45  ;;  %v591_v9 = vadd.f32 %v590_v61, %v547_v52 }
 0x21c   :  { %v561_v16 = vadd.f32 %v560_v62, %v542_v33  ;;  %v567_v46 = vadd.f32 %v566_v1, %v543_v51  ;;  %v303_v44 = vmul.f32 10.0, %v1122_v35  ;;  %v305_v35 = vmul.f32 10.0, %v1134_v43 }
 0x21d   :  { %v596_v10 = vadd.f32 %v577_v3, %v553_v5  ;;  %v597_v11 = vadd.f32 %v583_v39, %v559_v7  ;;  %v586_v15 = vrot.slane %v585_v8, 2  ;;  %v592_v50 = vrot.slane %v591_v9, 2 }
 0x21e   :  { %v562_v56 = vrot.slane %v561_v16, 2  ;;  %v568_v58 = vrot.slane %v567_v46, 2  ;;  %v1212_v59 = vmul.f32 10.0, %v1142_v2  ;;  %v1215_v60 = vmul.f32 10.0, %v1138_v48 }
 0x21f   :  { %846 = vrcp.f32 %v596_v10  ;;  %v587_v18 = vadd.f32 %v586_v15, %v585_v8  ;;  %v593_v21 = vadd.f32 %v592_v50, %v591_v9 }
 0x220   :  { %v563_v22 = vadd.f32 %v562_v56, %v561_v16  ;;  %v569_v23 = vadd.f32 %v568_v58, %v567_v46  ;;  %848 = vrcp.f32 %v597_v11  ;;  %v317_v61 = vmax.f32 %v1215_v60, %v1212_v59 }
 0x221   :  { %v588_v24 = vrot.slane %v587_v18, 1  ;;  %v594_v19 = vrot.slane %v593_v21, 1 }
 0x222   :  { %v564_v63 = vrot.slane %v563_v22, 1  ;;  %v570_v27 = vrot.slane %v569_v23, 1 }
 0x223   :  { %v589_v28 = vadd.f32 %v588_v24, %v587_v18  ;;  %v595_v29 = vadd.f32 %v594_v19, %v593_v21 }
 0x224   :  { %v565_v34 = vadd.f32 %v564_v63, %v563_v22  ;;  %v571_v0 = vadd.f32 %v570_v27, %v569_v23 }
 0x225   :  { %v847_v36 = vpop.eup %846 }
 0x226   :  { %v849_v13 = vpop.eup %848  ;;  %v604_v14 = vmul.f32 %v847_v36, %v1177_v53  ;;  %v608_v31 = vmul.f32 %v847_v36, %v1173_v25  ;;  %v598_v37 = vadd.f32 %v589_v28, %v565_v34  ;;  %v599_v38 = vadd.f32 %v595_v29, %v571_v0 }
 0x227   :  { %v605_v40 = vmul.f32 %v849_v13, %v1179_v6  ;;  %v609_v41 = vmul.f32 %v849_v13, %v1175_v4  ;;  %v302_v53 = vmul.f32 10.0, %v1114_v20  ;;  %v301_v20 = vmul.f32 10.0, %v1112_v32 }
 0x228   :  { %850 = vrcp.f32 %v598_v37 }
 0x229   :  { %v612_v42 = vadd.f32 %v605_v40, %v604_v14  ;;  %v618_v17 = vadd.f32 %v609_v41, %v608_v31  ;;  %852 = vrcp.f32 %v599_v38  ;;  %v311_v4 = vmax.f32 %v302_v53, %v303_v44 }
 0x22b   :  { %613 = vadd.xlane.f32.xlu2 %v612_v42  ;;  %619 = vadd.xlane.f32.xlu0 %v618_v17 }
 0x22e   :  { %v851_v47 = vpop.eup %850 }
 0x22f   :  { %v853_v49 = vpop.eup %852  ;;  %v1195_v26 = vmul.f32 %v851_v47, %v546_v45  ;;  %v1197_v25 = vmul.f32 %v851_v47, %v542_v33  ;;  %v300_v45 = vmul.f32 10.0, %v1109_v30 }
 0x230   :  { %v1199_v54 = vmul.f32 %v853_v49, %v547_v52  ;;  %v1201_v6 = vmul.f32 %v853_v49, %v543_v51  ;;  %v304_v52 = vmul.f32 10.0, %v1125_v12 }
 0x231   :  { %v308_v51 = vmax.f32 %v300_v45, %v301_v20 }
 0x232   :  { %v621_v55 = vadd.f32 %v1199_v54, %v1195_v26  ;;  %v615_v57 = vadd.f32 %v1201_v6, %v1197_v25  ;;  %v314_v33 = vmax.f32 %v304_v52, %v305_v35 }
 0x233   :  { %312 = vmax.xlane.f32.xlu0 %v311_v4 }
 0x234   :  { %622 = vadd.xlane.f32.xlu1 %v621_v55  ;;  %616 = vadd.xlane.f32.xlu2 %v615_v57 }
 0x23c   :  { %315 = vmax.xlane.f32.xlu1 %v314_v33  ;;  %309 = vmax.xlane.f32.xlu2 %v308_v51 }
 0x244   :  { %318 = vmax.xlane.f32.xlu2 %v317_v61 }
 0x29e   :  { %v614_v32 = vpop.xlane.xlu2 %613  ;;  %v620_v43 = vpop.xlane.xlu0 %619 }
 0x29f   :  { %v624_v62 = vmax.f32 %v614_v32, 1e-30  ;;  %v626_v30 = vmax.f32 %v620_v43, 1e-30 }
 0x2a1   :  { %854 = vrcp.f32 %v624_v62 }
 0x2a2   :  { %856 = vrcp.f32 %v626_v30 }
 0x2a6   :  { %v313_v12 = vpop.xlane.xlu0 %312 }
 0x2a7   :  { %v855_v1 = vpop.eup %854  ;;  %v623_v3 = vpop.xlane.xlu1 %622  ;;  %v1219_v5 = vsub.f32 %v302_v53, %v313_v12  ;;  %v1221_v2 = vsub.f32 %v303_v44, %v313_v12 }
 0x2a8   :  { %v617_v39 = vpop.xlane.xlu2 %616  ;;  %v857_v48 = vpop.eup %856  ;;  %v1223_v8 = vmul.f32 %v855_v1, %v604_v14  ;;  %v1225_v9 = vmul.f32 %v855_v1, %v605_v40  ;;  %v627_v15 = vmax.f32 %v623_v3, 1e-30 }
 0x2a9   :  { %v625_v7 = vmax.f32 %v617_v39, 1e-30  ;;  %v1227_v16 = vmul.f32 %v857_v48, %v608_v31  ;;  %v1229_v46 = vmul.f32 %v857_v48, %v609_v41  ;;  %v332_v10 = vmul.f32 1.442695, %v1219_v5 }
 0x2aa   :  { %v334_v11 = vmul.f32 1.442695, %v1221_v2  ;;  %v640_v50 = vrot.slane %v1223_v8, 4  ;;  %v646_v56 = vrot.slane %v1225_v9, 4 }
 0x2ab   :  { %v664_v58 = vrot.slane %v1227_v16, 4  ;;  %v670_v18 = vrot.slane %v1229_v46, 4  ;;  %858 = vrcp.f32 %v625_v7 }
 0x2ac   :  { %860 = vpow2.f32 %v332_v10  ;;  %v641_v21 = vadd.f32 %v640_v50, %v1223_v8  ;;  %v647_v22 = vadd.f32 %v646_v56, %v1225_v9 }
 0x2ad   :  { %v665_v23 = vadd.f32 %v664_v58, %v1227_v16  ;;  %v671_v24 = vadd.f32 %v670_v18, %v1229_v46  ;;  %862 = vpow2.f32 %v334_v11 }
 0x2ae   :  { %864 = vrcp.f32 %v627_v15  ;;  %v642_v19 = vrot.slane %v641_v21, 2  ;;  %v648_v63 = vrot.slane %v647_v22, 2 }
 0x2af   :  { %v666_v27 = vrot.slane %v665_v23, 2  ;;  %v672_v28 = vrot.slane %v671_v24, 2  ;;  %v316_v29 = vpop.xlane.xlu1 %315 }
 0x2b0   :  { %v310_v34 = vpop.xlane.xlu2 %309  ;;  %v1241_v0 = vsub.f32 %v304_v52, %v316_v29  ;;  %v1243_v36 = vsub.f32 %v305_v35, %v316_v29  ;;  %v643_v40 = vadd.f32 %v642_v19, %v641_v21  ;;  %v649_v41 = vadd.f32 %v648_v63, %v647_v22 }
 0x2b1   :  { %v1245_v13 = vsub.f32 %v300_v45, %v310_v34  ;;  %v1247_v14 = vsub.f32 %v301_v20, %v310_v34  ;;  %v859_v31 = vpop.eup %858  ;;  %v667_v37 = vadd.f32 %v666_v27, %v665_v23  ;;  %v673_v38 = vadd.f32 %v672_v28, %v671_v24 }
 0x2b2   :  { %v861_v42 = vpop.eup %860  ;;  %v1250_v17 = vmul.f32 %v859_v31, %v1197_v25  ;;  %v1253_v44 = vmul.f32 %v859_v31, %v1201_v6  ;;  %v336_v47 = vmul.f32 1.442695, %v1241_v0  ;;  %v338_v49 = vmul.f32 1.442695, %v1243_v36 }
 0x2b3   :  { %v863_v53 = vpop.eup %862  ;;  %v328_v4 = vmul.f32 1.442695, %v1245_v13  ;;  %v330_v55 = vmul.f32 1.442695, %v1247_v14  ;;  %v644_v57 = vrot.slane %v643_v40, 1  ;;  %v650_v20 = vrot.slane %v649_v41, 1 }
 0x2b4   :  { %v865_v35 = vpop.eup %864  ;;  %v652_v45 = vrot.slane %v1250_v17, 4  ;;  %v658_v25 = vrot.slane %v1253_v44, 4  ;;  %866 = vpow2.f32 %v336_v47  ;;  %v347_v52 = vadd.f32 %v863_v53, %v861_v42 }
 0x2b5   :  { %868 = vpow2.f32 %v338_v49  ;;  %v645_v6 = vadd.f32 %v644_v57, %v643_v40  ;;  %v651_v33 = vadd.f32 %v650_v20, %v649_v41  ;;  %v668_v51 = vrot.slane %v667_v37, 1 }
 0x2b6   :  { %v653_v61 = vadd.f32 %v652_v45, %v1250_v17  ;;  %v659_v32 = vadd.f32 %v658_v25, %v1253_v44  ;;  %870 = vpow2.f32 %v328_v4  ;;  %348 = vadd.xlane.f32.xlu1 %v347_v52  ;;  %v674_v43 = vrot.slane %v673_v38, 1 }
 0x2b7   :  { %872 = vpow2.f32 %v330_v55  ;;  %v669_v30 = vadd.f32 %v668_v51, %v667_v37  ;;  %v638_v12 = vmul.f32 %v865_v35, %v1195_v26  ;;  %v639_v1 = vmul.f32 %v865_v35, %v1199_v54 }
 0x2b8   :  { %v319_v62 = vpop.xlane.xlu2 %318  ;;  %v654_v3 = vrot.slane %v653_v61, 2  ;;  %v660_v39 = vrot.slane %v659_v32, 2  ;;  %v675_v10 = vadd.f32 %v674_v43, %v673_v38 }
 0x2b9   :  { %v1266_v48 = vsub.f32 %v1215_v60, %v319_v62  ;;  %v1269_v7 = vsub.f32 %v1212_v59, %v319_v62  ;;  %v688_v11 = vadd.f32 %v669_v30, %v645_v6  ;;  %v676_v15 = vrot.slane %v638_v12, 4 }
 0x2ba   :  { %v682_v50 = vrot.slane %v639_v1, 4  ;;  %v867_v56 = vpop.eup %866  ;;  %v655_v58 = vadd.f32 %v654_v3, %v653_v61  ;;  %v661_v18 = vadd.f32 %v660_v39, %v659_v32  ;;  %v689_v22 = vadd.f32 %v675_v10, %v651_v33 }
 0x2bb   :  { %v340_v21 = vmul.f32 1.442695, %v1266_v48  ;;  %v342_v26 = vmul.f32 1.442695, %v1269_v7  ;;  %v869_v54 = vpop.eup %868  ;;  %874 = vrcp.f32 %v688_v11  ;;  %v677_v23 = vadd.f32 %v676_v15, %v638_v12 }
 0x2bc   :  { %v683_v60 = vadd.f32 %v682_v50, %v639_v1  ;;  %v871_v24 = vpop.eup %870  ;;  %v350_v59 = vadd.f32 %v869_v54, %v867_v56  ;;  %v656_v19 = vrot.slane %v655_v58, 1  ;;  %v662_v27 = vrot.slane %v661_v18, 1 }
 0x2bd   :  { %876 = vpow2.f32 %v340_v21  ;;  %v873_v63 = vpop.eup %872  ;;  %v678_v28 = vrot.slane %v677_v23, 2 }
 0x2be   :  { %878 = vpow2.f32 %v342_v26  ;;  %v684_v29 = vrot.slane %v683_v60, 2  ;;  %v344_v34 = vadd.f32 %v873_v63, %v871_v24  ;;  %351 = vadd.xlane.f32.xlu2 %v350_v59  ;;  %v657_v40 = vadd.f32 %v656_v19, %v655_v58 }
 0x2bf   :  { %880 = vrcp.f32 %v689_v22  ;;  %v679_v31 = vadd.f32 %v678_v28, %v677_v23  ;;  %v663_v41 = vadd.f32 %v662_v27, %v661_v18 }
 0x2c0   :  { %v685_v37 = vadd.f32 %v684_v29, %v683_v60  ;;  %345 = vadd.xlane.f32.xlu0 %v344_v34 }
 0x2c1   :  { %v875_v38 = vpop.eup %874  ;;  %v680_v42 = vrot.slane %v679_v31, 1 }
 0x2c2   :  { %v686_v47 = vrot.slane %v685_v37, 1  ;;  %v696_v4 = vmul.f32 %v875_v38, %v1223_v8  ;;  %v700_v33 = vmul.f32 %v875_v38, %v1227_v16 }
 0x2c3   :  { %v877_v49 = vpop.eup %876  ;;  %v681_v55 = vadd.f32 %v680_v42, %v679_v31 }
 0x2c4   :  { %v879_v53 = vpop.eup %878  ;;  %v687_v57 = vadd.f32 %v686_v47, %v685_v37 }
 0x2c5   :  { %v881_v20 = vpop.eup %880  ;;  %v353_v35 = vadd.f32 %v879_v53, %v877_v49  ;;  %v690_v25 = vadd.f32 %v681_v55, %v657_v40 }
 0x2c6   :  { %v697_v45 = vmul.f32 %v881_v20, %v1225_v9  ;;  %v691_v52 = vadd.f32 %v687_v57, %v663_v41  ;;  %v701_v51 = vmul.f32 %v881_v20, %v1229_v46 }
 0x2c7   :  { %882 = vrcp.f32 %v690_v25 }
 0x2c8   :  { %v704_v6 = vadd.f32 %v697_v45, %v696_v4  ;;  %354 = vadd.xlane.f32.xlu0 %v353_v35  ;;  %884 = vrcp.f32 %v691_v52  ;;  %v710_v62 = vadd.f32 %v701_v51, %v700_v33 }
 0x2ca   :  { %705 = vadd.xlane.f32.xlu1 %v704_v6 }
 0x2cd   :  { %v883_v61 = vpop.eup %882 }
 0x2ce   :  { %v885_v32 = vpop.eup %884  ;;  %v702_v8 = vmul.f32 %v883_v61, %v638_v12  ;;  %v698_v43 = vmul.f32 %v883_v61, %v1250_v17 }
 0x2cf   :  { %v703_v30 = vmul.f32 %v885_v32, %v639_v1  ;;  %v699_v9 = vmul.f32 %v885_v32, %v1253_v44 }
 0x2d0   :  { %711 = vadd.xlane.f32.xlu0 %v710_v62 }
 0x2d1   :  { %v713_v3 = vadd.f32 %v703_v30, %v702_v8  ;;  %v707_v39 = vadd.f32 %v699_v9, %v698_v43 }
 0x2d3   :  { %714 = vadd.xlane.f32.xlu1 %v713_v3  ;;  %708 = vadd.xlane.f32.xlu2 %v707_v39 }
 0x329   :  { %v349_v11 = vpop.xlane.xlu1 %348 }
 0x32a   :  { %886 = vlog2.f32 %v349_v11 }
 0x330   :  { %v887_v50 = vpop.eup %886 }
 0x331   :  { %v352_v56 = vpop.xlane.xlu2 %351  ;;  %v359_v17 = vmul.f32 0.6931472, %v887_v50 }
 0x333   :  { %v346_v10 = vpop.xlane.xlu0 %345  ;;  %v366_v58 = vsub.f32 %v1219_v5, %v359_v17  ;;  %v367_v21 = vsub.f32 %v1221_v2, %v359_v17 }
 0x33b   :  { %v355_v16 = vpop.xlane.xlu0 %354 }
 0x33d   :  { %v706_v15 = vpop.xlane.xlu1 %705 }
 0x33e   :  { %v716_v46 = vmax.f32 %v706_v15, 1e-30 }
 0x340   :  { %888 = vrcp.f32 %v716_v46 }
 0x341   :  { %890 = vlog2.f32 %v355_v16 }
 0x342   :  { %892 = vlog2.f32 %v352_v56 }
 0x343   :  { %894 = vlog2.f32 %v346_v10  ;;  %v712_v12 = vpop.xlane.xlu0 %711 }
 0x344   :  { %v718_v44 = vmax.f32 %v712_v12, 1e-30 }
 0x346   :  { %v889_v1 = vpop.eup %888  ;;  %v715_v26 = vpop.xlane.xlu1 %714  ;;  %896 = vrcp.f32 %v718_v44 }
 0x347   :  { %v891_v18 = vpop.eup %890  ;;  %v709_v54 = vpop.xlane.xlu2 %708  ;;  %v724_v22 = vmul.f32 %v889_v1, %v696_v4  ;;  %v725_v23 = vmul.f32 %v889_v1, %v697_v45  ;;  %v719_v60 = vmax.f32 %v715_v26, 1e-30 }
 0x348   :  { %v717_v24 = vmax.f32 %v709_v54, 1e-30  ;;  %v893_v59 = vpop.eup %892  ;;  %v363_v28 = vmul.f32 0.6931472, %v891_v18 }
 0x349   :  { %v732_v19 = vmul.f32 %v724_v22, %v366_v58  ;;  %v733_v63 = vmul.f32 %v725_v23, %v367_v21  ;;  %v895_v27 = vpop.eup %894  ;;  %898 = vrcp.f32 %v719_v60  ;;  %v361_v34 = vmul.f32 0.6931472, %v893_v59 }
 0x34a   :  { %900 = vrcp.f32 %v717_v24  ;;  %v357_v31 = vmul.f32 0.6931472, %v895_v27  ;;  %v370_v2 = vsub.f32 %v1266_v48, %v363_v28  ;;  %v371_v37 = vsub.f32 %v1269_v7, %v363_v28 }
 0x34b   :  { %v736_v29 = vadd.f32 %v733_v63, %v732_v19  ;;  %v368_v42 = vsub.f32 %v1241_v0, %v361_v34  ;;  %v369_v55 = vsub.f32 %v1243_v36, %v361_v34 }
 0x34c   :  { %v897_v5 = vpop.eup %896  ;;  %v364_v4 = vsub.f32 %v1245_v13, %v357_v31  ;;  %v365_v35 = vsub.f32 %v1247_v14, %v357_v31  ;;  %v758_v13 = vlaneseq }
 0x34d   :  { %737 = vadd.xlane.f32.xlu2 %v736_v29  ;;  %v728_v38 = vmul.f32 %v897_v5, %v700_v33  ;;  %v729_v40 = vmul.f32 %v897_v5, %v701_v51 }
 0x34f   :  { %v899_v41 = vpop.eup %898  ;;  %v734_v47 = vmul.f32 %v728_v38, %v370_v2  ;;  %v735_v49 = vmul.f32 %v729_v40, %v371_v37 }
 0x350   :  { %v901_v53 = vpop.eup %900  ;;  %v730_v57 = vmul.f32 %v899_v41, %v702_v8  ;;  %v731_v20 = vmul.f32 %v899_v41, %v703_v30  ;;  %v759_v8 = vand.u32 127, %v758_v13 }
 0x351   :  { %v726_v45 = vmul.f32 %v901_v53, %v698_v43  ;;  %v727_v48 = vmul.f32 %v901_v53, %v699_v9  ;;  %v739_v25 = vadd.f32 %v735_v49, %v734_v47 }
 0x352   :  { %v744_v7 = vmul.f32 %v730_v57, %v368_v42  ;;  %v745_v52 = vmul.f32 %v731_v20, %v369_v55 }
 0x353   :  { %v742_v6 = vmul.f32 %v726_v45, %v364_v4  ;;  %v743_v33 = vmul.f32 %v727_v48, %v365_v35  ;;  %740 = vadd.xlane.f32.xlu0 %v739_v25 }
 0x354   :  { %v749_v0 = vadd.f32 %v745_v52, %v744_v7 }
 0x355   :  { %v746_v51 = vadd.f32 %v743_v33, %v742_v6 }
 0x356   :  { %750 = vadd.xlane.f32.xlu2 %v749_v0 }
 0x357   :  { %747 = vadd.xlane.f32.xlu1 %v746_v51 }
 0x3c0   :  { %v738_v61 = vpop.xlane.xlu2 %737 }
 0x3c6   :  { %v741_v32 = vpop.xlane.xlu0 %740 }
 0x3c9   :  { %v751_v36 = vpop.xlane.xlu2 %750 }
 0x3ca   :  { %v748_v62 = vpop.xlane.xlu1 %747  ;;  %v753_v30 = vadd.f32 %v751_v36, %v741_v32 }
 0x3cb   :  { %v752_v14 = vadd.f32 %v748_v62, %v738_v61 }
 0x3cc   :  { %v755_v43 = vmul.f32 -0.5, %v753_v30 }
 0x3cd   :  { %v754_v9 = vmul.f32 -0.5, %v752_v14 }
 0x3ce   :  { %v761_v3 = vperm.slane %v755_v43, %v759_v8 }
 0x3cf   :  { %v760_v39 = vperm.slane %v754_v9, %v759_v8 }
 0x3d1   :  { %v763_v10 = vsel %vm762_vm0, %v761_v3, %v760_v39 }
 0x3d2   :  { %766 = vst.msk [vmem:[#allocation8] sm:$0x3] %vm765_vm4, %v763_v10 }
 0x3d3   :  { %777 = dma.vmem_to_hbm [thread:$0]  %s773_s7, 32, %s775_s10, [#allocation4]  }
 0x3d4   :  { %1002 = dma.done.wait [#allocation4], 32  }
 0x3d5   :  { %1003 = vsyncadd [#allocation4], 4294967264 }
 0x3d6   :  { %782 = vsyncpa [#allocation3], 1 }
 0x3d7   :  { %783 = vsyncpa [#allocation6], 1 }
 0x3d8   :  { %784 = vsyncpa [#allocation4], 1 }

</bundles_post_ra>
